<compile_context>
chip_gen: v5e
topology: v5e:2x2
jax: 0.10.0
libtpu: 0.0.40
codegen_flags: <defaults>
</compile_context>

<pallas_src>
import math
import functools

import jax
import jax.numpy as jnp
from jax import lax
from jax.experimental import pallas as pl
from jax.experimental.pallas import tpu as pltpu


# ----------------------------------------------------------------------------
# Pallas kernels
# ----------------------------------------------------------------------------

def _linear_kernel(x_ref, wt_ref, b_ref, o_ref):
    # y = x @ W^T + b, with W^T pre-transposed on the host: wt is (d_in, d_out).
    acc = jnp.dot(x_ref[...], wt_ref[...], preferred_element_type=jnp.float32)
    o_ref[...] = (acc + b_ref[...]).astype(o_ref.dtype)


def _flash_attn_kernel(*refs, scale, has_mask):
    """Flash-style attention for one (batch*head, q-tile, kv-tile) grid step."""
    if has_mask:
        q_ref, k_ref, v_ref, mask_ref, o_ref, m_sc, l_sc, acc_sc = refs
    else:
        q_ref, k_ref, v_ref, o_ref, m_sc, l_sc, acc_sc = refs
        mask_ref = None

    ki = pl.program_id(2)

    @pl.when(ki == 0)
    def _():
        m_sc[...] = jnp.full_like(m_sc, -jnp.inf)
        l_sc[...] = jnp.zeros_like(l_sc)
        acc_sc[...] = jnp.zeros_like(acc_sc)

    # Fold 1/sqrt(d_k) into q (tq*d_k mul instead of a tq*tk mul on scores).
    q = q_ref[0] * scale                       # (tq, d_k)
    k = k_ref[0]                               # (tk, d_k)
    v = v_ref[0]                               # (tk, d_k)

    # scores = q @ k^T without an explicit transpose (contract last dims).
    s = lax.dot_general(q, k,
                        dimension_numbers=(((1,), (1,)), ((), ())),
                        preferred_element_type=jnp.float32)   # (tq, tk) f32

    if has_mask:
        s = jnp.where(mask_ref[0] == 0, jnp.float32(-1000000000.0), s)

    # Online softmax update.
    m_prev = m_sc[...]
    m_new = jnp.maximum(m_prev, jnp.max(s, axis=-1, keepdims=True))
    alpha = jnp.exp(m_prev - m_new)
    p = jnp.exp(s - m_new)
    l_sc[...] = alpha * l_sc[...] + jnp.sum(p, axis=-1, keepdims=True)
    acc_sc[...] = alpha * acc_sc[...] + jnp.dot(
        p.astype(v.dtype), v, preferred_element_type=jnp.float32)
    m_sc[...] = m_new

    @pl.when(ki == pl.num_programs(2) - 1)
    def _():
        o_ref[0] = (acc_sc[...] * pl.reciprocal(l_sc[...])).astype(o_ref.dtype)


# ----------------------------------------------------------------------------
# Wrappers
# ----------------------------------------------------------------------------

def _pick_tile(s, pref):
    """Largest legal tile: full dim if small, else a 128-multiple divisor."""
    if s <= pref:
        return s
    for t in (pref, pref // 2, 128):
        if t >= 128 and s % t == 0:
            return t
    return s  # fallback: untiled along this axis (still correct)


def pallas_linear(x, w_t, b, *, tm=256):
    """x: (N, d_in), w_t: (d_in, d_out) [already transposed], b: (d_out,)."""
    N, d_in = x.shape
    d_out = w_t.shape[1]
    tm = N if N <= tm else tm                  # full block or multiple-of-8 tile
    grid = (pl.cdiv(N, tm),)
    return pl.pallas_call(
        _linear_kernel,
        grid=grid,
        out_shape=jax.ShapeDtypeStruct((N, d_out), x.dtype),
        in_specs=[
            pl.BlockSpec((tm, d_in), lambda i: (i, 0)),       # activation tile
            pl.BlockSpec((d_in, d_out), lambda i: (0, 0)),    # weight resident
            pl.BlockSpec((1, d_out), lambda i: (0, 0)),       # bias resident
        ],
        out_specs=pl.BlockSpec((tm, d_out), lambda i: (i, 0)),
        compiler_params=pltpu.CompilerParams(
            dimension_semantics=("parallel",)),
    )(x, w_t, b.reshape(1, d_out))


def pallas_attention(q, k, v, mask=None, *, tq_pref=256, tk_pref=256):
    """q: (BH, Sq, d_k), k/v: (BH, Sk, d_k), mask: (B, Sq, Sk) or None.

    Returns attention output (BH, Sq, d_k) in float32.
    """
    BH, Sq, d_k = q.shape
    Sk = k.shape[1]
    scale = 1.0 / math.sqrt(d_k)

    tq = _pick_tile(Sq, tq_pref)
    tk = _pick_tile(Sk, tk_pref)
    n_q = Sq // tq
    n_kv = Sk // tk
    grid = (BH, n_q, n_kv)

    has_mask = mask is not None
    in_specs = [
        pl.BlockSpec((1, tq, d_k), lambda i, qi, ki: (i, qi, 0)),
        pl.BlockSpec((1, tk, d_k), lambda i, qi, ki: (i, ki, 0)),
        pl.BlockSpec((1, tk, d_k), lambda i, qi, ki: (i, ki, 0)),
    ]
    inputs = [q, k, v]
    if has_mask:
        heads_per_batch = BH // mask.shape[0]
        in_specs.append(
            pl.BlockSpec((1, tq, tk),
                         lambda i, qi, ki: (i // heads_per_batch, qi, ki)))
        inputs.append(mask)

    kernel = functools.partial(_flash_attn_kernel, scale=scale, has_mask=has_mask)
    return pl.pallas_call(
        kernel,
        grid=grid,
        out_shape=jax.ShapeDtypeStruct((BH, Sq, d_k), jnp.float32),
        in_specs=in_specs,
        out_specs=pl.BlockSpec((1, tq, d_k), lambda i, qi, ki: (i, qi, 0)),
        scratch_shapes=[
            pltpu.VMEM((tq, 1), jnp.float32),    # running max
            pltpu.VMEM((tq, 1), jnp.float32),    # running denom
            pltpu.VMEM((tq, d_k), jnp.float32),  # output accumulator
        ],
        compiler_params=pltpu.CompilerParams(
            dimension_semantics=("parallel", "parallel", "arbitrary")),
    )(*inputs)


class MultiHeadedAttentionPallas:
    """JAX/Pallas re-implementation of the PyTorch MultiHeadedAttention module."""

    def __init__(self, h, d_model, key, compute_dtype=jnp.float32):
        assert d_model % h == 0
        self.h = h
        self.d_k = d_model // h
        self.d_model = d_model
        # compute_dtype=jnp.bfloat16 feeds the MXU bf16 tiles (f32 accumulation);
        # default float32 to match the PyTorch reference bit-for-bit-ish.
        self.compute_dtype = compute_dtype

        ks = jax.random.split(key, 8)
        bound = 1.0 / math.sqrt(d_model)

        def init_linear(kw, kb):
            w = jax.random.uniform(kw, (d_model, d_model), jnp.float32, -bound, bound)
            b = jax.random.uniform(kb, (d_model,), jnp.float32, -bound, bound)
            return w, b

        # PyTorch convention: W is [out, in].
        self.w_q, self.b_q = init_linear(ks[0], ks[1])
        self.w_k, self.b_k = init_linear(ks[2], ks[3])
        self.w_v, self.b_v = init_linear(ks[4], ks[5])
        self.w_o, self.b_o = init_linear(ks[6], ks[7])

        # Pre-transposed weights (d_in, d_out) so kernels never transpose.
        self.wq_t = self.w_q.T
        self.wk_t = self.w_k.T
        self.wv_t = self.w_v.T
        self.wo_t = self.w_o.T
        # Fused QKV weight: one projection kernel, one read of the activation.
        self.wqkv_t = jnp.concatenate([self.wq_t, self.wk_t, self.wv_t], axis=1)
        self.bqkv = jnp.concatenate([self.b_q, self.b_k, self.b_v], axis=0)

    def __call__(self, query, key, value, attention_mask=None):
        B, Sq, D = query.shape
        Sk = key.shape[1]
        h, d_k = self.h, self.d_k

        if query is key and key is value:
            # --- fused QKV projection (self-attention fast path) ---
            qkv = pallas_linear(query.reshape(B * Sq, D), self.wqkv_t, self.bqkv)
            qkv = (qkv.reshape(B, Sq, 3, h, d_k)
                       .transpose(2, 0, 3, 1, 4)
                       .reshape(3, B * h, Sq, d_k))
            qh, kh, vh = qkv[0], qkv[1], qkv[2]
        else:
            # --- separate projections (cross-attention path) ---
            def proj_split(x, w_t, b, S):
                y = pallas_linear(x.reshape(B * S, D), w_t, b)
                return (y.reshape(B, S, h, d_k)
                          .transpose(0, 2, 1, 3)
                          .reshape(B * h, S, d_k))

            qh = proj_split(query, self.wq_t, self.b_q, Sq)
            kh = proj_split(key, self.wk_t, self.b_k, Sk)
            vh = proj_split(value, self.wv_t, self.b_v, Sk)

        cd = self.compute_dtype
        qh, kh, vh = qh.astype(cd), kh.astype(cd), vh.astype(cd)

        # Mask stays (B, Sq, Sk): no all-ones materialization, no head replication.
        mask = None
        if attention_mask is not None:
            mask = attention_mask.astype(jnp.float32)

        attn_out = pallas_attention(qh, kh, vh, mask)   # (B*h, Sq, d_k) f32

        # TODO(synk): attention_weightings (full (B,h,Sq,Sk) probabilities) are not
        # materialized — flash accumulation avoids the O(S^2) HBM traffic.
        self.attention_weightings = None

        merged = (attn_out.reshape(B, h, Sq, d_k)
                  .transpose(0, 2, 1, 3)
                  .reshape(B * Sq, D)).astype(query.dtype)
        result = pallas_linear(merged, self.wo_t, self.b_o)
        return result.reshape(B, Sq, D)


# ----------------------------------------------------------------------------
# Pure-JAX reference for validation
# ----------------------------------------------------------------------------

def reference_forward(mha, query, key, value, attention_mask=None):
    B, Sq, D = query.shape
    Sk = key.shape[1]
    h, d_k = mha.h, mha.d_k

    def lin(x, w, b):
        return x @ w.T + b

    q = lin(query, mha.w_q, mha.b_q).reshape(B, Sq, h, d_k).transpose(0, 2, 1, 3)
    k = lin(key, mha.w_k, mha.b_k).reshape(B, Sk, h, d_k).transpose(0, 2, 1, 3)
    v = lin(value, mha.w_v, mha.b_v).reshape(B, Sk, h, d_k).transpose(0, 2, 1, 3)

    scores = jnp.einsum("bhqd,bhkd->bhqk", q, k) / math.sqrt(d_k)
    if attention_mask is not None:
        m = attention_mask.reshape(B, 1, Sq, Sk)
        scores = jnp.where(m == 0, -1000000000.0, scores)
    w = jax.nn.softmax(scores, axis=-1)
    out = jnp.einsum("bhqk,bhkd->bhqd", w, v)
    out = out.transpose(0, 2, 1, 3).reshape(B, Sq, D)
    return lin(out, mha.w_o, mha.b_o)


# ----------------------------------------------------------------------------
# Main
# ----------------------------------------------------------------------------

if __name__ == "__main__":
    B, S, d_model, h = 2, 8, 32, 4

    root = jax.random.PRNGKey(0)
    k_param, k_x, k_q, k_k, k_v = jax.random.split(root, 5)

    mha = MultiHeadedAttentionPallas(h, d_model, k_param)

    # Test 1: self-attention (fused QKV path), no mask (no-mask kernel variant).
    x = jax.random.normal(k_x, (B, S, d_model), jnp.float32)
    out1 = jax.block_until_ready(mha(x, x, x, attention_mask=None))
    ref1 = reference_forward(mha, x, x, x, None)
    assert out1.shape == (B, S, d_model)
    assert jnp.allclose(out1, ref1, atol=2e-4, rtol=2e-4), "self-attn mismatch"

    # Test 2: distinct q/k/v with a (B, S, S) mask (masked kernel variant).
    q_in = jax.random.normal(k_q, (B, S, d_model), jnp.float32)
    k_in = jax.random.normal(k_k, (B, S, d_model), jnp.float32)
    v_in = jax.random.normal(k_v, (B, S, d_model), jnp.float32)
    causal = jnp.tril(jnp.ones((S, S), jnp.float32))
    mask = jnp.broadcast_to(causal, (B, S, S))
    out2 = jax.block_until_ready(mha(q_in, k_in, v_in, attention_mask=mask))
    ref2 = reference_forward(mha, q_in, k_in, v_in, mask)
    assert jnp.allclose(out2, ref2, atol=2e-4, rtol=2e-4), "masked attn mismatch"

    print("KERNEL_OK")
</pallas_src>

<mosaic_0001>
module attributes {stable_mosaic.version = 11 : i64} {
  func.func @_linear_kernel(%arg0: i32, %arg1: memref<16x32xf32, #tpu.memory_space<vmem>>, %arg2: memref<32x96xf32, #tpu.memory_space<vmem>>, %arg3: memref<1x96xf32, #tpu.memory_space<vmem>>, %arg4: memref<16x96xf32, #tpu.memory_space<vmem>>) attributes {dimension_semantics = [#tpu.dimension_semantics<parallel>], iteration_bounds = array<i64: 1>, scalar_prefetch = 0 : i64, scratch_operands = 0 : i64, tpu.core_type = #tpu.core_type<tc>, window_params = [{transform_indices = @transform_0, window_bounds = array<i64: 16, 32>}, {pipeline_mode = #tpu.pipeline_mode<synchronous>, transform_indices = @transform_1, window_bounds = array<i64: 32, 96>}, {pipeline_mode = #tpu.pipeline_mode<synchronous>, transform_indices = @transform_2, window_bounds = array<i64: 1, 96>}, {transform_indices = @transform_3, window_bounds = array<i64: 16, 96>}]} {
    %c0 = arith.constant 0 : index
    %c0_0 = arith.constant 0 : index
    %0 = vector.load %arg1[%c0, %c0_0] : memref<16x32xf32, #tpu.memory_space<vmem>>, vector<16x32xf32>
    %c0_1 = arith.constant 0 : index
    %c0_2 = arith.constant 0 : index
    %1 = vector.load %arg2[%c0_1, %c0_2] : memref<32x96xf32, #tpu.memory_space<vmem>>, vector<32x96xf32>
    %cst = arith.constant dense<0.000000e+00> : vector<16x96xf32>
    %2 = tpu.matmul %0, %1, %cst {dimension_numbers = #tpu.dot_dimension_numbers<[1], [0], [0], [1], [0, 0, 1, 1], [], []>} : vector<16x32xf32>, vector<32x96xf32>, vector<16x96xf32> -> vector<16x96xf32>
    %c0_3 = arith.constant 0 : index
    %c0_4 = arith.constant 0 : index
    %3 = vector.load %arg3[%c0_3, %c0_4] : memref<1x96xf32, #tpu.memory_space<vmem>>, vector<1x96xf32>
    %4 = vector.broadcast %3 : vector<1x96xf32> to vector<16x96xf32>
    %5 = arith.addf %2, %4 : vector<16x96xf32>
    %c0_5 = arith.constant 0 : index
    %c0_6 = arith.constant 0 : index
    %6 = vector.load %arg4[%c0_5, %c0_6] : memref<16x96xf32, #tpu.memory_space<vmem>>, vector<16x96xf32>
    tpu.vector_store %arg4[%c0_5, %c0_6], %5 {strides = array<i32>} : memref<16x96xf32, #tpu.memory_space<vmem>>, vector<16x96xf32>,
    return
  }
  func.func @transform_0(%arg0: i32) -> (i32, i32) {
    %c0_i32 = arith.constant 0 : i32
    %c0_i32_0 = arith.constant 0 : i32
    return %arg0, %c0_i32 : i32, i32
  }
  func.func @transform_1(%arg0: i32) -> (i32, i32) {
    %c0_i32 = arith.constant 0 : i32
    %c0_i32_0 = arith.constant 0 : i32
    %c0_i32_1 = arith.constant 0 : i32
    return %c0_i32, %c0_i32_0 : i32, i32
  }
  func.func @transform_2(%arg0: i32) -> (i32, i32) {
    %c0_i32 = arith.constant 0 : i32
    %c0_i32_0 = arith.constant 0 : i32
    %c0_i32_1 = arith.constant 0 : i32
    return %c0_i32, %c0_i32_0 : i32, i32
  }
  func.func @transform_3(%arg0: i32) -> (i32, i32) {
    %c0_i32 = arith.constant 0 : i32
    %c0_i32_0 = arith.constant 0 : i32
    return %arg0, %c0_i32 : i32, i32
  }
}

</mosaic_0001>

<bundles_post_ra>
// kernel: tpu_custom_call.1
= control target key start
LH: loop header
LB: loop body
LE: loop exit
PB: predicated region body
PF: predicated region fallthrough
CT: control target
= control target key end

     0   :  { %8 = vsyncpa [#allocation3], 0  ;;  %s246_s0 = inlined_call_operand.hbm [shape: f32[16,32], index: 0, kind: input, shape index: {}]   ;;  %s247_s1 = inlined_call_operand.hbm [shape: f32[32,96], index: 1, kind: input, shape index: {}]   ;;  %s248_s2 = inlined_call_operand.vmem [shape: f32[1,96], index: 2, kind: input, shape index: {}]   ;;  %s249_s3 = inlined_call_operand.hbm [shape: f32[16,96], index: 3, kind: output, shape index: {}]  }
   0x1   :  { %9 = vsyncpa [#allocation6], 0 }
   0x2   :  { %10 = vsyncpa [#allocation4], 0  ;;  %s15_s14 = sshll.u32 %s246_s0, 4  ;;  %s200_s15 = smov [#allocation2]   ;;  %s16_s14 = int_to_ptr.hbm [resolvable:$true] %s15_s14 }
   0x3   :  { %s17_s16 = sshll.u32 %s200_s15, 4  ;;  %s28_s19 = sshll.u32 %s247_s1, 4  ;;  %s18_s16 = int_to_ptr.vmem [resolvable:$true] %s17_s16  ;;  %s29_s19 = int_to_ptr.hbm [resolvable:$true] %s28_s19 }
   0x4   :  { %s201_s20 = smov 128   ;;  %s202_s21 = smov 8  }
   0x5   :  { %23 = dma.hbm_to_vmem [thread:$0]  %s16_s14, 256, %s18_s16, [#allocation3], %s201_s20, %s201_s20, %s202_s21  }
   0x6   :  { %s203_s22 = smov [#allocation5]  }
   0x7   :  { %s30_s23 = sshll.u32 %s203_s22, 4  ;;  %s31_s23 = int_to_ptr.vmem [resolvable:$true] %s30_s23 }
   0x8   :  { %36 = dma.hbm_to_vmem [thread:$0]  %s29_s19, 512, %s31_s23, [#allocation6], %s201_s20, %s201_s20, %s202_s21  }
   0x9   :  { %194 = dma.done.wait [#allocation3], 256  }
   0xa   :  { %195 = vsyncadd [#allocation3], 4294967040 }
   0xb   :  { %196 = dma.done.wait [#allocation6], 512  }
   0xc   :  { %197 = vsyncadd [#allocation6], 4294966784  ;;  %v52_v0 = vld [vmem:[#allocation5 + $0x18] sm:$0xff]  ;;  %v51_v1 = vld [vmem:[#allocation5 + $0x10] sm:$0xff]  ;;  %vm57_vm0 = vcmask 261120   ;;  %s204_s24 = smov [#allocation7]  }
   0xd   :  { %76 = vmatpush.msra.mxu0 %v52_v0  ;;  %112 = vmatpush.msra.mxu1 %v52_v0  ;;  %v50_v2 = vld [vmem:[#allocation5 + $0x8] sm:$0xff]  ;;  %v49_v3 = vld [vmem:[#allocation5] sm:$0xff]  ;;  %v47_v4 = vld [vmem:[#allocation2] sm:$0xff]  ;;  %s94_s25 = sshll.u32 %s204_s24, 4  ;;  %s96_s28 = sshll.u32 %s249_s3, 4  ;;  %vm87_vm1 = vcmask 785408   ;;  %s95_s25 = int_to_ptr.vmem [resolvable:$true] %s94_s25  ;;  %s97_s28 = int_to_ptr.hbm [resolvable:$true] %s96_s28 }
   0xe   :  { %v48_v5 = vld [vmem:[#allocation2 + $0x8] sm:$0xff]  ;;  %v121_v6 = vld [vmem:[%s248_s2] ss:$0 sm:$0xff] }
   0xf   :  { %77 = vmatpush.msra.mxu0 %v51_v1  ;;  %113 = vmatpush.msra.mxu1 %v51_v1 }
  0x11   :  { %78 = vmatpush.msra.mxu0 %v50_v2  ;;  %114 = vmatpush.msra.mxu1 %v50_v2 }
  0x13   :  { %79 = vmatpush.msra.mxu0 %v49_v3  ;;  %115 = vmatpush.msra.mxu1 %v49_v3 }
  0x14   :  { %110 = vmatmul.msk.f32.vlgmr.msra.gmra.mxu0 %vm57_vm0, %v47_v4  ;;  %111 = vmatmul.msk.f32.vlgmr.msra.gmra.mxu1 %vm57_vm0, %v48_v5 }
  0x91   :  { %v81_v7 = vpop.f32.mrf.mxu0  ;;  %v84_v8 = vpop.f32.mrf.mxu1 }
  0x92   :  { %v82_v9 = vadd.f32 %v121_v6, %v81_v7  ;;  %v85_v10 = vadd.f32 %v121_v6, %v84_v8 }
  0x94   :  { %88 = vst.msk [vmem:[#allocation7] sm:$0xff] %vm87_vm1, %v82_v9 }
  0x95   :  { %89 = vst.msk [vmem:[#allocation7 + $0x8] sm:$0xff] %vm87_vm1, %v85_v10 }
  0x96   :  { %102 = dma.vmem_to_hbm [thread:$0]  %s95_s25, 256, %s97_s28, [#allocation4], %s201_s20, %s201_s20, %s202_s21  }
  0x97   :  { %198 = dma.done.wait [#allocation4], 256  }
  0x98   :  { %199 = vsyncadd [#allocation4], 4294967040 }
  0x99   :  { %107 = vsyncpa [#allocation3], 1 }
  0x9a   :  { %108 = vsyncpa [#allocation6], 1 }
  0x9b   :  { %109 = vsyncpa [#allocation4], 1 }

</bundles_post_ra>
